<compile_context>
chip_gen: v7x
topology: tpu7x:2x2x1
jax: 0.10.0
libtpu: 0.0.40
codegen_flags: <defaults>
</compile_context>

<pallas_src>
import jax
import jax.numpy as jnp
from jax.experimental import pallas as pl
from jax.experimental.pallas import tpu as pltpu


def _value_mlp_kernel(x_ref, w1_ref, b1_ref, w2_ref, b2_ref, w3_ref, b3_ref, o_ref):
    # x_ref : [state_dim, bt]   (batch on lanes)
    # w1_ref: [hidden, state_dim]   w2_ref: [hidden, hidden]
    # b1/b2 : [hidden, 1] f32       w3_ref: [hidden, 1] f32
    # b3_ref: (1,) f32 in SMEM      o_ref : [1, bt] f32 (lane-dense)

    # Layer 1: Linear + ReLU (MXU matmul, f32 accumulation; elementwise in f32)
    h1 = jnp.dot(w1_ref[...], x_ref[...], preferred_element_type=jnp.float32)
    h1 = jnp.maximum(h1 + b1_ref[...], 0.0)

    # Layer 2: Linear + ReLU (cast back to MXU input dtype, accumulate f32)
    h2 = jnp.dot(w2_ref[...], h1.astype(w2_ref.dtype),
                 preferred_element_type=jnp.float32)
    h2 = jnp.maximum(h2 + b2_ref[...], 0.0)

    # Output layer (out_dim == 1): VPU broadcast-multiply + sublane reduction.
    # Produces a lane-dense [1, bt] row directly; skips an MXU pass whose
    # result would be a single column.
    v = jnp.sum(h2 * w3_ref[...], axis=0, keepdims=True) + b3_ref[0]
    o_ref[...] = v.astype(o_ref.dtype)


def _pick_batch_tile(B):
    """Large lane-dense tiles; >=2 grid steps when B is big enough (v7x megacore)."""
    if B <= 256:
        return B                                   # one block; full-extent dims are legal
    if B <= 2048:
        return max(128, ((B + 255) // 256) * 128)  # ~B/2, rounded up to a multiple of 128
    return 1024                                    # keeps per-step VMEM well under 16 MiB


def value_function_forward(state, params, *, batch_tile=None,
                           compute_dtype=jnp.bfloat16,
                           state_is_feature_major=False):
    """v = w3 . relu(W2 relu(W1 x + b1) + b2) + b3, fused in one Pallas kernel.

    state : [B, state_dim] f32 (or [state_dim, B] if state_is_feature_major)
    params: dict w1[state_dim,hidden], b1[hidden], w2[hidden,hidden], b2[hidden],
            w3[hidden,1], b3[1]   (same convention as nn.Linear applied as x @ W + b)
    returns: [B] f32 (squeeze_output=True)
    """
    if state_is_feature_major:
        state_dim, B = state.shape
        x = state
    else:
        B, state_dim = state.shape
        # Layout plumbing: put batch on the lane axis for the whole kernel.
        x = state.T

    hidden = params["w1"].shape[1]

    if batch_tile is None:
        batch_tile = _pick_batch_tile(B)
    n_tiles = -(-B // batch_tile)
    B_pad = n_tiles * batch_tile

    # bf16 MXU inputs (dominant HBM stream halved); pad remainder with zeros.
    x = x.astype(compute_dtype)
    if B_pad != B:
        x = jnp.pad(x, ((0, 0), (0, B_pad - B)))

    w1t = params["w1"].T.astype(compute_dtype)            # [hidden, state_dim]
    w2t = params["w2"].T.astype(compute_dtype)            # [hidden, hidden]
    w3 = params["w3"].astype(jnp.float32)                 # [hidden, 1] (VPU path, f32)
    b1 = params["b1"].reshape(hidden, 1).astype(jnp.float32)
    b2 = params["b2"].reshape(hidden, 1).astype(jnp.float32)
    b3 = params["b3"].reshape(1).astype(jnp.float32)      # scalar via SMEM

    out = pl.pallas_call(
        _value_mlp_kernel,
        out_shape=jax.ShapeDtypeStruct((1, B_pad), jnp.float32),
        grid_spec=pltpu.PrefetchScalarGridSpec(
            num_scalar_prefetch=0,
            grid=(n_tiles,),
            in_specs=[
                pl.BlockSpec((state_dim, batch_tile), lambda i: (0, i)),  # state
                pl.BlockSpec((hidden, state_dim), lambda i: (0, 0)),      # w1^T
                pl.BlockSpec((hidden, 1), lambda i: (0, 0)),              # b1
                pl.BlockSpec((hidden, hidden), lambda i: (0, 0)),         # w2^T
                pl.BlockSpec((hidden, 1), lambda i: (0, 0)),              # b2
                pl.BlockSpec((hidden, 1), lambda i: (0, 0)),              # w3
                pl.BlockSpec(memory_space=pltpu.MemorySpace.SMEM),        # b3
            ],
            out_specs=pl.BlockSpec((1, batch_tile), lambda i: (0, i)),    # lane-dense
        ),
        compiler_params=pltpu.CompilerParams(
            dimension_semantics=("parallel",),
        ),
    )(x, w1t, b1, w2t, b2, w3, b3)

    return out[0, :B]  # squeeze_output=True (+ drop remainder padding)


def init_value_function_params(key, state_dim, hidden_dim):
    """Deterministic synthetic parameter init (shapes match the nn.Linear stack)."""
    k1, k2, k3 = jax.random.split(key, 3)
    s1 = 1.0 / jnp.sqrt(state_dim)
    s2 = 1.0 / jnp.sqrt(hidden_dim)
    return {
        "w1": jax.random.uniform(k1, (state_dim, hidden_dim), jnp.float32, -s1, s1),
        "b1": jnp.zeros((hidden_dim,), jnp.float32),
        "w2": jax.random.uniform(k2, (hidden_dim, hidden_dim), jnp.float32, -s2, s2),
        "b2": jnp.zeros((hidden_dim,), jnp.float32),
        "w3": jax.random.uniform(k3, (hidden_dim, 1), jnp.float32, -s2, s2),
        "b3": jnp.zeros((1,), jnp.float32),
    }


def _reference_forward(state, params):
    h1 = jnp.maximum(state @ params["w1"] + params["b1"], 0.0)
    h2 = jnp.maximum(h1 @ params["w2"] + params["b2"], 0.0)
    return (h2 @ params["w3"] + params["b3"])[:, 0]


if __name__ == "__main__":
    key = jax.random.PRNGKey(0)
    k_x, k_p = jax.random.split(key)

    # Small shapes consistent with ValueFunction (l=2 hidden layers, scalar output)
    batch, state_dim, hidden_dim = 8, 16, 32
    state = jax.random.normal(k_x, (batch, state_dim), dtype=jnp.float32)
    params = init_value_function_params(k_p, state_dim, hidden_dim)
    v_ref = _reference_forward(state, params)

    # 1) f32-input path: exact match
    v_f32 = jax.block_until_ready(
        value_function_forward(state, params, compute_dtype=jnp.float32))
    assert v_f32.shape == (batch,)
    assert jnp.allclose(v_f32, v_ref, atol=1e-5, rtol=1e-5)

    # 2) default bf16-input / f32-accumulate path: loose tolerance
    v_bf16 = jax.block_until_ready(value_function_forward(state, params))
    assert v_bf16.shape == (batch,)
    assert jnp.allclose(v_bf16, v_ref, atol=5e-2, rtol=5e-2)

    # 3) multi-tile grid + remainder padding (exercises pipelined batch tiles)
    big_B = 4100
    state_big = jax.random.normal(k_x, (big_B, state_dim), dtype=jnp.float32)
    v_big = jax.block_until_ready(
        value_function_forward(state_big, params, batch_tile=1024))
    v_big_ref = _reference_forward(state_big, params)
    assert v_big.shape == (big_B,)
    assert jnp.allclose(v_big, v_big_ref, atol=5e-2, rtol=5e-2)

    print("KERNEL_OK")
</pallas_src>

<mosaic_0001>
module attributes {stable_mosaic.version = 11 : i64} {
  func.func @_value_mlp_kernel(%arg0: i32, %arg1: memref<16x8xf32, #tpu.memory_space<vmem>>, %arg2: memref<32x16xf32, #tpu.memory_space<vmem>>, %arg3: memref<32x1xf32, #tpu.memory_space<vmem>>, %arg4: memref<32x32xf32, #tpu.memory_space<vmem>>, %arg5: memref<32x1xf32, #tpu.memory_space<vmem>>, %arg6: memref<32x1xf32, #tpu.memory_space<vmem>>, %arg7: memref<1xf32, #tpu.memory_space<smem>>, %arg8: memref<1x8xf32, #tpu.memory_space<vmem>>) attributes {dimension_semantics = [#tpu.dimension_semantics<parallel>], iteration_bounds = array<i64: 1>, scalar_prefetch = 0 : i64, scratch_operands = 0 : i64, tpu.core_type = #tpu.core_type<tc>, window_params = [{transform_indices = @transform_0, window_bounds = array<i64: 16, 8>}, {pipeline_mode = #tpu.pipeline_mode<synchronous>, transform_indices = @transform_1, window_bounds = array<i64: 32, 16>}, {pipeline_mode = #tpu.pipeline_mode<synchronous>, transform_indices = @transform_2, window_bounds = array<i64: 32, 1>}, {pipeline_mode = #tpu.pipeline_mode<synchronous>, transform_indices = @transform_3, window_bounds = array<i64: 32, 32>}, {pipeline_mode = #tpu.pipeline_mode<synchronous>, transform_indices = @transform_4, window_bounds = array<i64: 32, 1>}, {pipeline_mode = #tpu.pipeline_mode<synchronous>, transform_indices = @transform_5, window_bounds = array<i64: 32, 1>}, {transform_indices = @transform_6, window_bounds = array<i64: 1>}, {transform_indices = @transform_7, window_bounds = array<i64: 1, 8>}]} {
    %c0 = arith.constant 0 : index
    %c0_0 = arith.constant 0 : index
    %0 = vector.load %arg2[%c0, %c0_0] : memref<32x16xf32, #tpu.memory_space<vmem>>, vector<32x16xf32>
    %c0_1 = arith.constant 0 : index
    %c0_2 = arith.constant 0 : index
    %1 = vector.load %arg1[%c0_1, %c0_2] : memref<16x8xf32, #tpu.memory_space<vmem>>, vector<16x8xf32>
    %cst = arith.constant dense<0.000000e+00> : vector<32x8xf32>
    %2 = tpu.matmul %0, %1, %cst {dimension_numbers = #tpu.dot_dimension_numbers<[1], [0], [0], [1], [0, 0, 1, 1], [], []>} : vector<32x16xf32>, vector<16x8xf32>, vector<32x8xf32> -> vector<32x8xf32>
    %c0_3 = arith.constant 0 : index
    %c0_4 = arith.constant 0 : index
    %3 = vector.load %arg3[%c0_3, %c0_4] : memref<32x1xf32, #tpu.memory_space<vmem>>, vector<32x1xf32>
    %4 = vector.broadcast %3 : vector<32x1xf32> to vector<32x8xf32>
    %5 = arith.addf %2, %4 : vector<32x8xf32>
    %cst_5 = arith.constant 0.000000e+00 : f32
    %6 = vector.broadcast %cst_5 : f32 to vector<32x8xf32>
    %7 = arith.maximumf %5, %6 : vector<32x8xf32>
    %c0_6 = arith.constant 0 : index
    %c0_7 = arith.constant 0 : index
    %8 = vector.load %arg4[%c0_6, %c0_7] : memref<32x32xf32, #tpu.memory_space<vmem>>, vector<32x32xf32>
    %cst_8 = arith.constant dense<0.000000e+00> : vector<32x8xf32>
    %9 = tpu.matmul %8, %7, %cst_8 {dimension_numbers = #tpu.dot_dimension_numbers<[1], [0], [0], [1], [0, 0, 1, 1], [], []>} : vector<32x32xf32>, vector<32x8xf32>, vector<32x8xf32> -> vector<32x8xf32>
    %c0_9 = arith.constant 0 : index
    %c0_10 = arith.constant 0 : index
    %10 = vector.load %arg5[%c0_9, %c0_10] : memref<32x1xf32, #tpu.memory_space<vmem>>, vector<32x1xf32>
    %11 = vector.broadcast %10 : vector<32x1xf32> to vector<32x8xf32>
    %12 = arith.addf %9, %11 : vector<32x8xf32>
    %cst_11 = arith.constant 0.000000e+00 : f32
    %13 = vector.broadcast %cst_11 : f32 to vector<32x8xf32>
    %14 = arith.maximumf %12, %13 : vector<32x8xf32>
    %c0_12 = arith.constant 0 : index
    %c0_13 = arith.constant 0 : index
    %15 = vector.load %arg6[%c0_12, %c0_13] : memref<32x1xf32, #tpu.memory_space<vmem>>, vector<32x1xf32>
    %16 = vector.broadcast %15 : vector<32x1xf32> to vector<32x8xf32>
    %17 = arith.mulf %14, %16 : vector<32x8xf32>
    %cst_14 = arith.constant dense<0.000000e+00> : vector<8xf32>
    %18 = vector.multi_reduction <add>, %17, %cst_14 [0] : vector<32x8xf32> to vector<8xf32>
    %19 = vector.shape_cast %18 : vector<8xf32> to vector<1x8xf32>
    %c0_15 = arith.constant 0 : index
    %20 = memref.load %arg7[%c0_15] : memref<1xf32, #tpu.memory_space<smem>>
    %21 = vector.broadcast %20 : f32 to vector<1x8xf32>
    %22 = arith.addf %19, %21 : vector<1x8xf32>
    %c0_16 = arith.constant 0 : index
    %c0_17 = arith.constant 0 : index
    %23 = vector.load %arg8[%c0_16, %c0_17] : memref<1x8xf32, #tpu.memory_space<vmem>>, vector<1x8xf32>
    tpu.vector_store %arg8[%c0_16, %c0_17], %22 {strides = array<i32>} : memref<1x8xf32, #tpu.memory_space<vmem>>, vector<1x8xf32>,
    return
  }
  func.func @transform_0(%arg0: i32) -> (i32, i32) {
    %c0_i32 = arith.constant 0 : i32
    %c0_i32_0 = arith.constant 0 : i32
    return %c0_i32, %arg0 : i32, i32
  }
  func.func @transform_1(%arg0: i32) -> (i32, i32) {
    %c0_i32 = arith.constant 0 : i32
    %c0_i32_0 = arith.constant 0 : i32
    %c0_i32_1 = arith.constant 0 : i32
    return %c0_i32, %c0_i32_0 : i32, i32
  }
  func.func @transform_2(%arg0: i32) -> (i32, i32) {
    %c0_i32 = arith.constant 0 : i32
    %c0_i32_0 = arith.constant 0 : i32
    %c0_i32_1 = arith.constant 0 : i32
    return %c0_i32, %c0_i32_0 : i32, i32
  }
  func.func @transform_3(%arg0: i32) -> (i32, i32) {
    %c0_i32 = arith.constant 0 : i32
    %c0_i32_0 = arith.constant 0 : i32
    %c0_i32_1 = arith.constant 0 : i32
    return %c0_i32, %c0_i32_0 : i32, i32
  }
  func.func @transform_4(%arg0: i32) -> (i32, i32) {
    %c0_i32 = arith.constant 0 : i32
    %c0_i32_0 = arith.constant 0 : i32
    %c0_i32_1 = arith.constant 0 : i32
    return %c0_i32, %c0_i32_0 : i32, i32
  }
  func.func @transform_5(%arg0: i32) -> (i32, i32) {
    %c0_i32 = arith.constant 0 : i32
    %c0_i32_0 = arith.constant 0 : i32
    %c0_i32_1 = arith.constant 0 : i32
    return %c0_i32, %c0_i32_0 : i32, i32
  }
  func.func @transform_6(%arg0: i32) -> i32 {
    %c0_i32 = arith.constant 0 : i32
    %c0_i32_0 = arith.constant 0 : i32
    return %c0_i32 : i32
  }
  func.func @transform_7(%arg0: i32) -> (i32, i32) {
    %c0_i32 = arith.constant 0 : i32
    %c0_i32_0 = arith.constant 0 : i32
    return %c0_i32, %arg0 : i32, i32
  }
}

</mosaic_0001>

<bundles_post_ra>
// kernel: tpu_custom_call.1
= control target key start
LH: loop header
LB: loop body
LE: loop exit
PB: predicated region body
PF: predicated region fallthrough
CT: control target
= control target key end

     0   :  { %vm58_vm0 = vcmask 130048   ;;  %v437_v4 = vmov 0   ;;  %s572_s0 = inlined_call_operand.vmem [shape: f32[16,8], index: 0, kind: input, shape index: {}]   ;;  %s573_s1 = inlined_call_operand.vmem [shape: f32[32,16], index: 1, kind: input, shape index: {}]   ;;  %s574_s2 = inlined_call_operand.vmem [shape: f32[32,1], index: 2, kind: input, shape index: {}]   ;;  %s575_s3 = inlined_call_operand.vmem [shape: f32[32,32], index: 3, kind: input, shape index: {}]   ;;  %s576_s4 = inlined_call_operand.vmem [shape: f32[32,1], index: 4, kind: input, shape index: {}]   ;;  %s577_s5 = inlined_call_operand.vmem [shape: f32[32,1], index: 5, kind: input, shape index: {}]   ;;  %s578_s6 = inlined_call_operand.<no memory space> [shape: f32[1], index: 6, kind: input, shape index: {}]   ;;  %s579_s7 = inlined_call_operand.hbm [shape: f32[1,8], index: 7, kind: output, shape index: {}]  }
   0x1   :  { %v32_v0 = vld [vmem:[%s572_s0] sm:$0xff]  ;;  %v33_v1 = vld [vmem:[%s572_s0 + $0x8] sm:$0xff]  ;;  %411 = vset.pattern.permute.xlu0 %v437_v4  ;;  %412 = vset.pattern.permute.xlu1 %v437_v4  ;;  %v36_v6 = vld [vmem:[%s574_s2 + $0x10] sm:$0xff] }
   0x2   :  { %v28_v2 = vld [vmem:[%s573_s1] sm:$0xff]  ;;  %v397_v3 = vpack.c.bf16 %v33_v1, %v32_v0  ;;  %v29_v7 = vld [vmem:[%s573_s1 + $0x8] sm:$0xff]  ;;  %50 = vperm.xlu1 %412, %v36_v6   ;;  %v30_v9 = vld [vmem:[%s573_s1 + $0x10] sm:$0xff] }
   0x3   :  { %377 = vmatprep.mubr.msk.f32.mxu0 %vm58_vm0, %v28_v2  ;;  %v34_v5 = vld [vmem:[%s574_s2] sm:$0xff]  ;;  %v35_v8 = vld [vmem:[%s574_s2 + $0x8] sm:$0xff]  ;;  %v37_v10 = vld [vmem:[%s574_s2 + $0x18] sm:$0xff] }
   0x4   :  { %398 = vmatprep.subr.bf16.mxu0 %v397_v3  ;;  %40 = vperm.xlu0 %411, %v34_v5  }
   0x5   :  { %400 = vmatpush3.bf16.msra.mxu0 %v397_v3 }
   0x6   :  { %13 = vsyncpa [#allocation4], 0  ;;  %v31_v11 = vld [vmem:[%s573_s1 + $0x18] sm:$0xff]  ;;  %55 = vperm.xlu1 %412, %v37_v10   ;;  %v164_v12 = vld [vmem:[%s576_s4] sm:$0xff]  ;;  %vm188_vm1 = vcmask 261120   ;;  %vm318_vm2 = vcmask 64512  }
   0x7   :  { %v165_v13 = vld [vmem:[%s576_s4 + $0x8] sm:$0xff]  ;;  %v166_v14 = vld [vmem:[%s576_s4 + $0x10] sm:$0xff]  ;;  %v167_v15 = vld [vmem:[%s576_s4 + $0x18] sm:$0xff]  ;;  %s438_s17 = smov [#allocation3]   ;;  %vm335_vm3 = vcmask 57344  }
   0x8   :  { %378 = vmatmul.mubr.msk.f32.vlgmr.msra.gmra.mrb[0].mxu0 %vm58_vm0, %v29_v7  ;;  %45 = vperm.xlu0 %411, %v35_v8   ;;  %v290_v16 = vld [vmem:[%s577_s5] sm:$0xff]  ;;  %v291_v17 = vld [vmem:[%s577_s5 + $0x8] sm:$0xff]  ;;  %v292_v18 = vld [vmem:[%s577_s5 + $0x10] sm:$0xff]  ;;  %s343_s18 = sshll.u32 %s438_s17, 4  ;;  %s344_s18 = int_to_ptr.vmem [resolvable:$true] %s343_s18 }
   0x9   :  { %380 = vmatprep.mubr.msk.f32.mxu0 %vm58_vm0, %v30_v9  ;;  %v293_v19 = vld [vmem:[%s577_s5 + $0x18] sm:$0xff]  ;;  %v160_v20 = vld [vmem:[%s575_s3] sm:$0xff]  ;;  %v161_v39 = vld [vmem:[%s575_s3 + $0x8] sm:$0xff]  ;;  %s413_s19 = scalar_lea.vmem %s344_s18, 16  ;;  %s417_s20 = scalar_lea.vmem %s344_s18, 32 }
   0xa   :  { %175 = vperm.xlu1 %412, %v165_v13   ;;  %391 = vmatprep.mubr.msk.f32.mxu1 %vm188_vm1, %v160_v20  ;;  %v162_v40 = vld [vmem:[%s575_s3 + $0x10] sm:$0xff]  ;;  %v163_v41 = vld [vmem:[%s575_s3 + $0x18] sm:$0xff]  ;;  %p414_p0 = scmp.ne.s32.totalorder %s344_s18, %s413_s19  ;;  %p418_p1 = scmp.lt.s32.totalorder %s344_s18, %s344_s18 }
   0xb   :  { %p419_p2 = scmp.lt.s32.totalorder %s417_s20, %s413_s19 }
   0xc   :  { %381 = vmatmul.mubr.msk.f32.gmra.mrb[2].mxu0 %vm58_vm0, %v31_v11  ;;  %170 = vperm.xlu0 %411, %v164_v12  }
   0xd   :  { %p420_p3 = por %p419_p2, %p418_p1 }
   0xe   :  { %185 = vperm.xlu1 %412, %v167_v15  }
   0xf   :  { %p421_p4 = pnand %p420_p3, %p414_p0 }
  0x10   :  { %180 = vperm.xlu0 %411, %v166_v14   ;;  %v333_v14 = vstv %s578_s6 }
  0x12   :  { %301 = vperm.xlu1 %412, %v291_v17  }
  0x14   :  { %296 = vperm.xlu0 %411, %v290_v16  }
  0x16   :  { %311 = vperm.xlu1 %412, %v293_v19  }
  0x18   :  { %306 = vperm.xlu0 %411, %v292_v18  }
  0x81   :  { %v51_v22 = vpop.permute.xlu1 %50 }
  0x83   :  { %v41_v21 = vpop.permute.xlu0 %40 }
  0x85   :  { %v56_v29 = vpop.permute.xlu1 %55 }
  0x87   :  { %v46_v23 = vpop.permute.xlu0 %45 }
  0x89   :  { %v176_v43 = vpop.permute.xlu1 %175 }
  0x8b   :  { %v171_v42 = vpop.permute.xlu0 %170 }
  0x8d   :  { %v186_v45 = vpop.permute.xlu1 %185 }
  0x8f   :  { %v181_v44 = vpop.permute.xlu0 %180 }
  0x91   :  { %v302_v51 = vpop.permute.xlu1 %301 }
  0x93   :  { %v297_v50 = vpop.permute.xlu0 %296 }
  0x95   :  { %v312_v1 = vpop.permute.xlu1 %311 }
  0x97   :  { %v307_v0 = vpop.permute.xlu0 %306 }
  0xdb   :  { %v379_v24 = vpop.f32.mrb[0].mxu0 }
  0xdc   :  { %v143_v25 = vadd.f32 %v379_v24, %v46_v23  ;;  %v137_v26 = vpop.f32.mrb[1].mxu0 }
  0xdd   :  { %v138_v27 = vadd.f32 %v137_v26, %v41_v21 }
  0xde   :  { %v157_v28 = vmax.f32 %v143_v25, 0.0 }
  0xdf   :  { %v156_v30 = vmax.f32 %v138_v27, 0.0  ;;  %v382_v31 = vpop.f32.mrb[2].mxu0 }
  0xe0   :  { %v153_v32 = vadd.f32 %v382_v31, %v56_v29  ;;  %v147_v33 = vpop.f32.mrb[3].mxu0 }
  0xe1   :  { %v148_v34 = vadd.f32 %v147_v33, %v51_v22  ;;  %v401_v35 = vpack.c.bf16 %v157_v28, %v156_v30 }
  0xe2   :  { %v159_v36 = vmax.f32 %v153_v32, 0.0 }
  0xe3   :  { %v158_v37 = vmax.f32 %v148_v34, 0.0  ;;  %402 = vmatprep.subr.bf16.mxu1 %v401_v35 }
  0xe4   :  { %404 = vmatpush3.bf16.msra.mxu1 %v401_v35 }
  0xe5   :  { %v405_v38 = vpack.c.bf16 %v159_v36, %v158_v37 }
  0xe7   :  { %406 = vmatprep.subr.bf16.mxu1 %v405_v38 }
  0xe8   :  { %408 = vmatpush3.bf16.msra.mxu1 %v405_v38 }
  0xeb   :  { %392 = vmatmul.mubr.msk.f32.vlgmr.msra.gmra.mrb[0].mxu1 %vm188_vm1, %v161_v39 }
  0xec   :  { %394 = vmatprep.mubr.msk.f32.mxu1 %vm188_vm1, %v162_v40 }
  0xef   :  { %395 = vmatmul.mubr.msk.f32.gmra.mrb[2].mxu1 %vm188_vm1, %v163_v41 }
 0x1be   :  { %v393_v46 = vpop.f32.mrb[0].mxu1 }
 0x1bf   :  { %v273_v47 = vadd.f32 %v393_v46, %v176_v43  ;;  %v267_v48 = vpop.f32.mrb[1].mxu1 }
 0x1c0   :  { %v268_v49 = vadd.f32 %v267_v48, %v171_v42 }
 0x1c1   :  { %v287_v52 = vmax.f32 %v273_v47, 0.0 }
 0x1c2   :  { %v286_v53 = vmax.f32 %v268_v49, 0.0  ;;  %v396_v54 = vpop.f32.mrb[2].mxu1 }
 0x1c3   :  { %v315_v55 = vmul.f32 %v302_v51, %v287_v52  ;;  %v283_v56 = vadd.f32 %v396_v54, %v186_v45  ;;  %v277_v57 = vpop.f32.mrb[3].mxu1 }
 0x1c4   :  { %v314_v58 = vmul.f32 %v297_v50, %v286_v53  ;;  %v278_v59 = vadd.f32 %v277_v57, %v181_v44 }
 0x1c5   :  { %v320_v60 = vsel %vm318_vm2, %v315_v55, 0.0  ;;  %v289_v61 = vmax.f32 %v283_v56, 0.0 }
 0x1c6   :  { %v319_v62 = vsel %vm318_vm2, %v314_v58, 0.0  ;;  %v288_v63 = vmax.f32 %v278_v59, 0.0 }
 0x1c7   :  { %v321_v2 = vadd.f32 %v320_v60, %v319_v62  ;;  %v317_v3 = vmul.f32 %v312_v1, %v289_v61 }
 0x1c8   :  { %v316_v4 = vmul.f32 %v307_v0, %v288_v63 }
 0x1c9   :  { %v324_v7 = vsel %vm318_vm2, %v317_v3, 0.0 }
 0x1ca   :  { %v322_v5 = vsel %vm318_vm2, %v316_v4, 0.0 }
 0x1cb   :  { %v323_v6 = vadd.f32 %v322_v5, %v321_v2 }
 0x1cd   :  { %v325_v8 = vadd.f32 %v324_v7, %v323_v6 }
 0x1cf   :  { %v326_v9 = vrot.slane %v325_v8, 4 }
 0x1d1   :  { %v327_v10 = vadd.f32 %v326_v9, %v325_v8 }
 0x1d3   :  { %v328_v11 = vrot.slane %v327_v10, 2 }
 0x1d5   :  { %v329_v12 = vadd.f32 %v328_v11, %v327_v10 }
 0x1d7   :  { %v330_v13 = vrot.slane %v329_v12, 1 }
 0x1d9   :  { %v331_v15 = vadd.f32 %v330_v13, %v329_v12 }
 0x1db   :  { %v334_v16 = vadd.f32 %v333_v14, %v331_v15 }
 0x1dd   :  { %336 = vst.msk [vmem:[#allocation3] sm:$0x1] %vm335_vm3, %v334_v16 }
 0x1de   :  { %424 = shalt.err (!%p421_p4)
}
 0x1df   :  { %s425_s23 = scalar_lea.hbm %s579_s7, 16 }
 0x1e0   :  { %p426_p5 = scmp.ne.s32.totalorder %s579_s7, %s425_s23  ;;  %p429_p6 = scmp.lt.u32.totalorder %s425_s23, %s579_s7 }
 0x1e2   :  { %p431_p7 = pnand %p429_p6, %p426_p5 }
 0x1e4   :  { %434 = shalt.err (!%p431_p7)
}
 0x1e5   :  { %346 = dma.vmem_to_hbm [thread:$0]  %s344_s18, 16, %s579_s7, [#allocation4]  }
 0x1e6   :  { %435 = dma.done.wait [#allocation4], 16  }
 0x1e7   :  { %436 = vsyncadd [#allocation4], 4294967280 }
 0x1e8   :  { %350 = vsyncpa [#allocation4], 1 }

</bundles_post_ra>
